<compile_context>
chip_gen: v7x
topology: tpu7x:2x2x1
jax: 0.10.0
libtpu: 0.0.40
codegen_flags: <defaults>
</compile_context>

<pallas_src>
import functools

import jax
import jax.numpy as jnp
from jax import lax
from jax.experimental import pallas as pl
from jax.experimental.pallas import tpu as pltpu


def _round_up(x, m):
    return (x + m - 1) // m * m


def _soft_select_attention_kernel(support_ref, query_ref, out_ref, *, true_dim):
    support = support_ref[...]                      # [F, Dp]  (native dtype)
    query = query_ref[...]                          # [TB, Dp] (native dtype)
    scale = true_dim ** (-0.5)

    # score[b, f] = sum_d query[b, d] * support[f, d]
    # Contract the last dims directly -> feeds the MXU without forming
    # support.T (no XLU transpose, no transposed VMEM temp).
    score = lax.dot_general(
        query,
        support,
        dimension_numbers=(((1,), (1,)), ((), ())),
        preferred_element_type=jnp.float32,
    ) * scale                                       # [TB, F] f32

    # Numerically-stable softmax over the few-shot axis.
    m = jnp.max(score, axis=1, keepdims=True)
    e = jnp.exp(score - m)
    denom = jnp.sum(e, axis=1, keepdims=True)
    att = e * pl.reciprocal(denom, approx=True)     # [TB, F] f32

    # center = att @ support -- keep support in its native dtype so bf16/fp8
    # inputs use the full-rate MXU path; accumulate in f32.
    center = jnp.dot(
        att.astype(support.dtype),
        support,
        preferred_element_type=jnp.float32,
    )                                               # [TB, Dp] f32
    out_ref[...] = center.astype(out_ref.dtype)


def _vmem_estimate_bytes(tile_b, d_pad, few, itemsize):
    # double-buffered query tile + output tile, (conservatively double-buffered)
    # resident support, plus f32 intermediates for one tile.
    io = 2 * (2 * tile_b * d_pad * itemsize)
    sup = 2 * few * d_pad * itemsize
    tmp = tile_b * d_pad * 4 + 2 * tile_b * few * 4
    return io + sup + tmp


def soft_select_attention(support, query, *, tile_b=None):
    """support: [F, D], query: [B, D] -> center: [B, D]."""
    few, d = support.shape
    batch, d2 = query.shape
    assert d == d2, "support and query must share the feature dim"
    out_dtype = query.dtype

    itemsize = jnp.dtype(query.dtype).itemsize
    # sublane granularity of the batch tile (8 for 32-bit, 16 for 16-bit, ...)
    sub = max(8, 32 // max(itemsize, 1))

    # Lane-dense layout: pad D to a multiple of 128 (zero columns do not change
    # the dot products; the softmax scale below uses the true D).
    d_pad = _round_up(d, 128)

    if tile_b is None:
        tile_b = min(512, _round_up(batch, sub))
        budget = 40 * 1024 * 1024
        while tile_b > sub and _vmem_estimate_bytes(tile_b, d_pad, few, itemsize) > budget:
            tile_b = _round_up(tile_b // 2, sub)
    assert tile_b % sub == 0, f"tile_b must be a multiple of {sub}"

    b_pad = _round_up(batch, tile_b)

    support_p = support
    query_p = query
    if d_pad != d:
        support_p = jnp.pad(support_p, ((0, 0), (0, d_pad - d)))
    if d_pad != d or b_pad != batch:
        query_p = jnp.pad(query_p, ((0, b_pad - batch), (0, d_pad - d)))

    grid = (b_pad // tile_b,)
    kernel = functools.partial(_soft_select_attention_kernel, true_dim=d)

    out = pl.pallas_call(
        kernel,
        out_shape=jax.ShapeDtypeStruct((b_pad, d_pad), out_dtype),
        grid_spec=pltpu.PrefetchScalarGridSpec(
            num_scalar_prefetch=0,
            grid=grid,
            in_specs=[
                # support is small; keep the full [F, Dp] block resident
                # (constant index_map -> no re-DMA across grid steps).
                pl.BlockSpec((few, d_pad), lambda i: (0, 0)),
                # query streamed in batch tiles.
                pl.BlockSpec((tile_b, d_pad), lambda i: (i, 0)),
            ],
            out_specs=pl.BlockSpec((tile_b, d_pad), lambda i: (i, 0)),
        ),
        compiler_params=pltpu.CompilerParams(
            dimension_semantics=("parallel",),
            vmem_limit_bytes=48 * 1024 * 1024,
        ),
    )(support_p, query_p)

    if b_pad != batch or d_pad != d:
        out = out[:batch, :d]
    return out


def soft_select_attention_ref(support, query):
    scale = support.shape[1] ** (-0.5)
    score = (query.astype(jnp.float32) @ support.astype(jnp.float32).T) * scale
    att = jax.nn.softmax(score, axis=1)
    return (att @ support.astype(jnp.float32)).astype(query.dtype)


if __name__ == "__main__":
    key = jax.random.PRNGKey(0)
    k1, k2, k3, k4 = jax.random.split(key, 4)

    # Case 1: nicely aligned small shapes.
    few_shot, batch, dim = 8, 8, 128
    support = jax.random.normal(k1, (few_shot, dim), dtype=jnp.float32)
    query = jax.random.normal(k2, (batch, dim), dtype=jnp.float32)
    out = jax.block_until_ready(soft_select_attention(support, query))
    ref = soft_select_attention_ref(support, query)
    assert out.shape == (batch, dim)
    assert jnp.allclose(out, ref, atol=2e-3, rtol=2e-3), "mismatch vs reference (case 1)"

    # Case 2: exercises the batch / feature padding paths (B not mult of 8,
    # D not mult of 128, F not mult of 8).
    few_shot2, batch2, dim2 = 5, 10, 96
    support2 = jax.random.normal(k3, (few_shot2, dim2), dtype=jnp.float32)
    query2 = jax.random.normal(k4, (batch2, dim2), dtype=jnp.float32)
    out2 = jax.block_until_ready(soft_select_attention(support2, query2))
    ref2 = soft_select_attention_ref(support2, query2)
    assert out2.shape == (batch2, dim2)
    assert jnp.allclose(out2, ref2, atol=2e-3, rtol=2e-3), "mismatch vs reference (case 2)"

    print("KERNEL_OK")
</pallas_src>

<mosaic_0001>
module attributes {stable_mosaic.version = 11 : i64} {
  func.func @_soft_select_attention_kernel(%arg0: i32, %arg1: memref<8x128xf32, #tpu.memory_space<vmem>>, %arg2: memref<8x128xf32, #tpu.memory_space<vmem>>, %arg3: memref<8x128xf32, #tpu.memory_space<vmem>>) attributes {dimension_semantics = [#tpu.dimension_semantics<parallel>], iteration_bounds = array<i64: 1>, scalar_prefetch = 0 : i64, scratch_operands = 0 : i64, tpu.core_type = #tpu.core_type<tc>, window_params = [{pipeline_mode = #tpu.pipeline_mode<synchronous>, transform_indices = @transform_0, window_bounds = array<i64: 8, 128>}, {transform_indices = @transform_1, window_bounds = array<i64: 8, 128>}, {transform_indices = @transform_2, window_bounds = array<i64: 8, 128>}]} {
    %c0 = arith.constant 0 : index
    %c0_0 = arith.constant 0 : index
    %0 = vector.load %arg1[%c0, %c0_0] : memref<8x128xf32, #tpu.memory_space<vmem>>, vector<8x128xf32>
    %c0_1 = arith.constant 0 : index
    %c0_2 = arith.constant 0 : index
    %1 = vector.load %arg2[%c0_1, %c0_2] : memref<8x128xf32, #tpu.memory_space<vmem>>, vector<8x128xf32>
    %cst = arith.constant dense<0.000000e+00> : vector<8x8xf32>
    %2 = tpu.matmul %1, %0, %cst {dimension_numbers = #tpu.dot_dimension_numbers<[1], [1], [0], [0], [0, 0, 1, 0], [], []>} : vector<8x128xf32>, vector<8x128xf32>, vector<8x8xf32> -> vector<8x8xf32>
    %cst_3 = arith.constant 0.0883883461 : f32
    %3 = vector.broadcast %cst_3 : f32 to vector<8x8xf32>
    %4 = arith.mulf %2, %3 : vector<8x8xf32>
    %cst_4 = arith.constant dense<0xFF800000> : vector<8xf32>
    %5 = vector.multi_reduction <maximumf>, %4, %cst_4 [1] : vector<8x8xf32> to vector<8xf32>
    %6 = vector.shape_cast %5 : vector<8xf32> to vector<8x1xf32>
    %7 = vector.broadcast %6 : vector<8x1xf32> to vector<8x8xf32>
    %8 = arith.subf %4, %7 : vector<8x8xf32>
    %9 = math.exp %8 : vector<8x8xf32>
    %cst_5 = arith.constant dense<0.000000e+00> : vector<8xf32>
    %10 = vector.multi_reduction <add>, %9, %cst_5 [1] : vector<8x8xf32> to vector<8xf32>
    %11 = vector.shape_cast %10 : vector<8xf32> to vector<8x1xf32>
    %12 = tpu.reciprocal %11 {approx = true} : vector<8x1xf32> -> vector<8x1xf32>
    %13 = vector.broadcast %12 : vector<8x1xf32> to vector<8x8xf32>
    %14 = arith.mulf %9, %13 : vector<8x8xf32>
    %cst_6 = arith.constant dense<0.000000e+00> : vector<8x128xf32>
    %15 = tpu.matmul %14, %0, %cst_6 {dimension_numbers = #tpu.dot_dimension_numbers<[1], [0], [0], [1], [0, 0, 1, 1], [], []>} : vector<8x8xf32>, vector<8x128xf32>, vector<8x128xf32> -> vector<8x128xf32>
    %c0_7 = arith.constant 0 : index
    %c0_8 = arith.constant 0 : index
    %16 = vector.load %arg3[%c0_7, %c0_8] : memref<8x128xf32, #tpu.memory_space<vmem>>, vector<8x128xf32>
    tpu.vector_store %arg3[%c0_7, %c0_8], %15 {strides = array<i32>} : memref<8x128xf32, #tpu.memory_space<vmem>>, vector<8x128xf32>,
    return
  }
  func.func @transform_0(%arg0: i32) -> (i32, i32) {
    %c0_i32 = arith.constant 0 : i32
    %c0_i32_0 = arith.constant 0 : i32
    %c0_i32_1 = arith.constant 0 : i32
    return %c0_i32, %c0_i32_0 : i32, i32
  }
  func.func @transform_1(%arg0: i32) -> (i32, i32) {
    %c0_i32 = arith.constant 0 : i32
    %c0_i32_0 = arith.constant 0 : i32
    return %arg0, %c0_i32 : i32, i32
  }
  func.func @transform_2(%arg0: i32) -> (i32, i32) {
    %c0_i32 = arith.constant 0 : i32
    %c0_i32_0 = arith.constant 0 : i32
    return %arg0, %c0_i32 : i32, i32
  }
}

</mosaic_0001>

<bundles_post_ra>
// kernel: tpu_custom_call.1
= control target key start
LH: loop header
LB: loop body
LE: loop exit
PB: predicated region body
PF: predicated region fallthrough
CT: control target
= control target key end

     0   :  { %7 = vsyncpa [#allocation3], 0  ;;  %s366_s0 = inlined_call_operand.hbm [shape: f32[8,128], index: 0, kind: input, shape index: {}]   ;;  %s367_s1 = inlined_call_operand.hbm [shape: f32[8,128], index: 1, kind: input, shape index: {}]   ;;  %s368_s2 = inlined_call_operand.hbm [shape: f32[8,128], index: 2, kind: output, shape index: {}]  }
   0x1   :  { %8 = vsyncpa [#allocation6], 0 }
   0x2   :  { %9 = vsyncpa [#allocation4], 0  ;;  %s307_s9 = smov [#allocation2]   ;;  %s308_s11 = smov [#allocation5]  }
   0x3   :  { %s16_s10 = sshll.u32 %s307_s9, 4  ;;  %s26_s12 = sshll.u32 %s308_s11, 4  ;;  %s17_s10 = int_to_ptr.vmem [resolvable:$true] %s16_s10  ;;  %s27_s12 = int_to_ptr.vmem [resolvable:$true] %s26_s12 }
   0x4   :  { %s235_s15 = scalar_lea.hbm %s366_s0, 128 }
   0x5   :  { %p236_p0 = scmp.ne.s32.totalorder %s366_s0, %s235_s15  ;;  %p239_p1 = scmp.lt.u32.totalorder %s235_s15, %s366_s0 }
   0x7   :  { %p241_p2 = pnand %p239_p1, %p236_p0 }
   0x9   :  { %244 = shalt.err (!%p241_p2)
}
   0xa   :  { %s245_s20 = scalar_lea.vmem %s17_s10, 128  ;;  %p250_p4 = scmp.lt.s32.totalorder %s17_s10, %s17_s10 }
   0xb   :  { %p246_p3 = scmp.ne.s32.totalorder %s17_s10, %s245_s20  ;;  %p251_p5 = scmp.lt.s32.totalorder %s245_s20, %s245_s20 }
   0xd   :  { %p252_p6 = por %p251_p5, %p250_p4 }
   0xf   :  { %p253_p7 = pnand %p252_p6, %p246_p3 }
  0x11   :  { %256 = shalt.err (!%p253_p7)
}
  0x12   :  { %19 = dma.hbm_to_vmem [thread:$0]  %s366_s0, 128, %s17_s10, [#allocation3]  }
  0x13   :  { %s257_s25 = scalar_lea.hbm %s367_s1, 128 }
  0x14   :  { %p258_p8 = scmp.ne.s32.totalorder %s367_s1, %s257_s25  ;;  %p261_p9 = scmp.lt.u32.totalorder %s257_s25, %s367_s1 }
  0x16   :  { %p263_p10 = pnand %p261_p9, %p258_p8 }
  0x18   :  { %266 = shalt.err (!%p263_p10)
}
  0x19   :  { %s267_s30 = scalar_lea.vmem %s27_s12, 128  ;;  %p272_p12 = scmp.lt.s32.totalorder %s27_s12, %s27_s12 }
  0x1a   :  { %p268_p11 = scmp.ne.s32.totalorder %s27_s12, %s267_s30  ;;  %p273_p13 = scmp.lt.s32.totalorder %s267_s30, %s267_s30 }
  0x1c   :  { %p274_p0 = por %p273_p13, %p272_p12 }
  0x1e   :  { %p275_p1 = pnand %p274_p0, %p268_p11 }
  0x20   :  { %278 = shalt.err (!%p275_p1)
}
  0x21   :  { %29 = dma.hbm_to_vmem [thread:$0]  %s367_s1, 128, %s27_s12, [#allocation6]  }
  0x22   :  { %301 = dma.done.wait [#allocation3], 128  }
  0x23   :  { %302 = vsyncadd [#allocation3], 4294967168 }
  0x24   :  { %303 = dma.done.wait [#allocation6], 128  }
  0x25   :  { %304 = vsyncadd [#allocation6], 4294967168  ;;  %v309_v0 = vmov 0.0   ;;  %vm310_vm0 = vmmov 0   ;;  %v36_v1 = vld [vmem:[#allocation2] sm:$0xff]  ;;  %v37_v2 = vld [vmem:[#allocation5] sm:$0xff] }
  0x26   :  { %216 = vmatprep.subr.mxu0 %v309_v0  ;;  %218 = vmatprep.mubr.msk.f32.mxu0 %vm310_vm0, %v309_v0  ;;  %vm109_vm1 = vcmask 64512   ;;  %s311_s1 = smov [#allocation7]  }
  0x27   :  { %221 = vmatprep.subr.mxu1 %v309_v0  ;;  %223 = vmatprep.mubr.msk.f32.mxu1 %vm310_vm0, %v309_v0  ;;  %s201_s4 = sshll.u32 %s311_s1, 4  ;;  %s202_s4 = int_to_ptr.vmem [resolvable:$true] %s201_s4 }
  0x28   :  { %217 = vmatpush3.xpose.msra.mxu0 %v36_v1  ;;  %222 = vmatpush3.msra.mxu1 %v36_v1  ;;  %s279_s5 = scalar_lea.vmem %s202_s4, 128  ;;  %p284_p3 = scmp.lt.s32.totalorder %s202_s4, %s202_s4 }
  0x29   :  { %p280_p2 = scmp.ne.s32.totalorder %s202_s4, %s279_s5  ;;  %p285_p4 = scmp.lt.s32.totalorder %s279_s5, %s279_s5 }
  0x2b   :  { %219 = vmatmul.mubr.f32.vlgmr.msra.gmra.mrb[0].mxu0 %v37_v2  ;;  %p286_p5 = por %p285_p4, %p284_p3 }
  0x2d   :  { %p287_p6 = pnand %p286_p5, %p280_p2 }
  0xfe   :  { %v104_v3 = vpop.f32.mrb[0].mxu0 }
  0xff   :  { %v108_v4 = vmul.f32 0.088388346, %v104_v3  ;;  %v220_v5 = vpop.f32.mrb[1].mxu0 }
 0x101   :  { %v110_v6 = vsel %vm109_vm1, %v108_v4, -inf }
 0x102   :  { %111 = vmax.xlane.f32.xlu0 %v110_v6 }
 0x18f   :  { %v112_v7 = vpop.xlane.xlu0 %111 }
 0x190   :  { %v113_v8 = vsub.f32 %v108_v4, %v112_v7 }
 0x192   :  { %v114_v9 = vmul.f32 1.442695, %v113_v8 }
 0x194   :  { %231 = vpow2.f32 %v114_v9 }
 0x19e   :  { %v232_v10 = vpop.eup %231 }
 0x19f   :  { %v116_v11 = vsel %vm109_vm1, %v232_v10, 0.0 }
 0x1a0   :  { %117 = vadd.xlane.f32.xlu0 %v116_v11 }
 0x22d   :  { %v118_v12 = vpop.xlane.xlu0 %117 }
 0x22e   :  { %233 = vrcp.f32 %v118_v12 }
 0x238   :  { %v234_v13 = vpop.eup %233 }
 0x239   :  { %v120_v14 = vmul.f32 %v234_v13, %v232_v10 }
 0x23b   :  { %224 = vmatmul.mubr.msk.f32.vlgmr.msra.gmra.mrb[0].mxu1 %vm109_vm1, %v120_v14 }
 0x30e   :  { %v190_v15 = vpop.f32.mrb[0].mxu1 }
 0x30f   :  { %194 = vst [vmem:[#allocation7] sm:$0xff] %v190_v15  ;;  %v225_v16 = vpop.f32.mrb[1].mxu1 }
 0x310   :  { %290 = shalt.err (!%p287_p6)
}
 0x311   :  { %s291_s8 = scalar_lea.hbm %s368_s2, 128 }
 0x312   :  { %p292_p7 = scmp.ne.s32.totalorder %s368_s2, %s291_s8  ;;  %p295_p8 = scmp.lt.u32.totalorder %s291_s8, %s368_s2 }
 0x314   :  { %p297_p9 = pnand %p295_p8, %p292_p7 }
 0x316   :  { %300 = shalt.err (!%p297_p9)
}
 0x317   :  { %204 = dma.vmem_to_hbm [thread:$0]  %s202_s4, 128, %s368_s2, [#allocation4]  }
 0x318   :  { %305 = dma.done.wait [#allocation4], 128  }
 0x319   :  { %306 = vsyncadd [#allocation4], 4294967168 }
 0x31a   :  { %208 = vsyncpa [#allocation3], 1 }
 0x31b   :  { %209 = vsyncpa [#allocation6], 1 }
 0x31c   :  { %210 = vsyncpa [#allocation4], 1 }

</bundles_post_ra>
